<compile_context>
chip_gen: v7x
topology: tpu7x:2x2x1
jax: 0.10.0
libtpu: 0.0.40
codegen_flags: <defaults>
</compile_context>

<pallas_src>
import functools

import jax
import jax.numpy as jnp
from jax.experimental import pallas as pl
from jax.experimental.pallas import tpu as pltpu

NUM_LATENT_FEATURE = 64
PREDICTED_MISSING_NEIGHBOR_NUM = 3
HIDDEN1 = 256
HIDDEN2 = 1024


def _round_up(x: int, m: int) -> int:
    return (x + m - 1) // m * m


def _gen_kernel(x_ref, w1_ref, b1_ref, w2_ref, b2_ref, w3_ref, b3_ref, o_ref):
    # fc1 + relu: bf16 inputs -> MXU, f32 accumulation; elementwise math in f32.
    h1 = jnp.dot(x_ref[...], w1_ref[...], preferred_element_type=jnp.float32)
    h1 = jnp.maximum(h1 + b1_ref[...], 0.0).astype(jnp.bfloat16)

    # fc2 + relu
    h2 = jnp.dot(h1, w2_ref[...], preferred_element_type=jnp.float32)
    h2 = jnp.maximum(h2 + b2_ref[...], 0.0).astype(jnp.bfloat16)

    # TODO(synk): training-mode gaussian noise + dropout(p=0.5) omitted
    # (module evaluated in inference mode; both are identity there).

    # fc_flat + tanh (tanh lowers to EUP). Output block is lane-dense
    # (padded to a multiple of 128 columns) so the store is an unmasked vst,
    # and it is written in bf16 to halve writeback bandwidth.
    y = jnp.dot(h2, w3_ref[...], preferred_element_type=jnp.float32)
    o_ref[...] = jnp.tanh(y + b3_ref[...]).astype(o_ref.dtype)


@functools.partial(jax.jit, static_argnames=("block_n",))
def _gen_forward_padded(x, w1, b1, w2, b2, w3, b3, *, block_n):
    """x:[Np,64] bf16 with Np % block_n == 0; weights bf16 [in,out]; biases
    f32 [1,out]. W3/b3 are already padded to a multiple of 128 output cols."""
    n, d_in = x.shape
    d_out_pad = w3.shape[1]
    grid = (n // block_n,)

    in_specs = [
        pl.BlockSpec((block_n, d_in), lambda i: (i, 0)),        # x tile (streamed)
        pl.BlockSpec((d_in, HIDDEN1), lambda i: (0, 0)),        # W1 (resident)
        pl.BlockSpec((1, HIDDEN1), lambda i: (0, 0)),           # b1
        pl.BlockSpec((HIDDEN1, HIDDEN2), lambda i: (0, 0)),     # W2
        pl.BlockSpec((1, HIDDEN2), lambda i: (0, 0)),           # b2
        pl.BlockSpec((HIDDEN2, d_out_pad), lambda i: (0, 0)),   # W3 (padded cols)
        pl.BlockSpec((1, d_out_pad), lambda i: (0, 0)),         # b3 (padded cols)
    ]
    out_spec = pl.BlockSpec((block_n, d_out_pad), lambda i: (i, 0))

    flops = 2 * n * (d_in * HIDDEN1 + HIDDEN1 * HIDDEN2 + HIDDEN2 * d_out_pad)
    bytes_accessed = (
        x.size * 2                                   # x (bf16)
        + (w1.size + w2.size + w3.size) * 2          # weights (bf16)
        + (b1.size + b2.size + b3.size) * 4          # biases (f32)
        + n * d_out_pad * 2                          # output (bf16)
    )

    return pl.pallas_call(
        _gen_kernel,
        out_shape=jax.ShapeDtypeStruct((n, d_out_pad), jnp.bfloat16),
        grid_spec=pltpu.PrefetchScalarGridSpec(
            num_scalar_prefetch=0,
            grid=grid,
            in_specs=in_specs,
            out_specs=out_spec,
        ),
        compiler_params=pltpu.CompilerParams(
            dimension_semantics=("parallel",),
        ),
        cost_estimate=pl.CostEstimate(
            flops=flops,
            transcendentals=n * d_out_pad,
            bytes_accessed=bytes_accessed,
        ),
    )(x, w1, b1, w2, b2, w3, b3)


def prepare_gen_params(w1, b1, w2, b2, w3, b3):
    """One-time parameter preparation (do NOT re-run per forward call).

    Casts weights to bf16, biases to f32 [1,out], and zero-pads W3/b3 columns
    to a lane-dense multiple of 128.  Returns (prepared_params, d_out)."""
    d_out = w3.shape[1]
    d_out_pad = _round_up(d_out, 128)
    w3p = jnp.zeros((w3.shape[0], d_out_pad), jnp.bfloat16).at[:, :d_out].set(
        w3.astype(jnp.bfloat16))
    b3p = jnp.zeros((1, d_out_pad), jnp.float32).at[:, :d_out].set(
        jnp.reshape(b3, (1, -1)).astype(jnp.float32))
    prepared = (
        w1.astype(jnp.bfloat16),
        jnp.reshape(b1, (1, -1)).astype(jnp.float32),
        w2.astype(jnp.bfloat16),
        jnp.reshape(b2, (1, -1)).astype(jnp.float32),
        w3p,
        b3p,
    )
    return prepared, d_out


def _choose_block_n(n: int) -> int:
    """Small N -> tile matched to the batch (min 16 rows for the bf16 tiles);
    large N -> big tiles to amortize the ~0.35us/step overhead, but always
    >= 2 grid steps so both v7x TensorCores get work."""
    if n <= 256:
        return max(16, _round_up(n, 16))
    for bn in (1024, 512, 256):
        if n >= 2 * bn:
            return bn
    return 256


def gen_forward(x, prepared_params, d_out, *, block_n=None, out_dtype=jnp.bfloat16):
    """FedSage+ Gen forward (inference).

    x: [N, 64].  `prepared_params` comes from `prepare_gen_params` (weights
    stored [in_features, out_features], i.e. transpose of PyTorch nn.Linear).
    Output dtype defaults to bf16 (the kernel pipeline is bf16-limited);
    pass out_dtype=jnp.float32 if f32 is genuinely required downstream."""
    n = x.shape[0]
    if block_n is None:
        block_n = _choose_block_n(n)
    n_pad = _round_up(max(n, 1), block_n)

    # Zero-pad the batch; cast matmul input to bf16 (f32 accumulation in-kernel).
    xp = jnp.zeros((n_pad, NUM_LATENT_FEATURE), jnp.bfloat16).at[:n].set(
        x.astype(jnp.bfloat16))

    out = _gen_forward_padded(xp, *prepared_params, block_n=block_n)
    out = out[:n, :d_out]
    return out if out.dtype == out_dtype else out.astype(out_dtype)


def init_gen_params(key, num_features, dtype=jnp.float32):
    """Deterministic synthetic parameters mirroring nn.Linear shapes.
    PyTorch stores weight as [out, in]; we keep [in, out] for x @ W."""
    d_out = PREDICTED_MISSING_NEIGHBOR_NUM * num_features
    k1, k2, k3, k4, k5, k6 = jax.random.split(key, 6)
    s1 = 1.0 / jnp.sqrt(NUM_LATENT_FEATURE)
    s2 = 1.0 / jnp.sqrt(HIDDEN1)
    s3 = 1.0 / jnp.sqrt(HIDDEN2)
    w1 = jax.random.uniform(k1, (NUM_LATENT_FEATURE, HIDDEN1), dtype, -s1, s1)
    b1 = jax.random.uniform(k2, (1, HIDDEN1), dtype, -s1, s1)
    w2 = jax.random.uniform(k3, (HIDDEN1, HIDDEN2), dtype, -s2, s2)
    b2 = jax.random.uniform(k4, (1, HIDDEN2), dtype, -s2, s2)
    w3 = jax.random.uniform(k5, (HIDDEN2, d_out), dtype, -s3, s3)
    b3 = jax.random.uniform(k6, (1, d_out), dtype, -s3, s3)
    return w1, b1, w2, b2, w3, b3


def gen_forward_ref(x, w1, b1, w2, b2, w3, b3):
    h1 = jnp.maximum(x @ w1 + b1, 0.0)
    h2 = jnp.maximum(h1 @ w2 + b2, 0.0)
    return jnp.tanh(h2 @ w3 + b3)


if __name__ == "__main__":
    num_features = 32          # Gen(num_features=32) -> output dim 3*32 = 96
    batch = 8                  # small demo batch (tile auto-sized to 16 rows)

    key = jax.random.PRNGKey(0)
    k_x, k_p = jax.random.split(key)
    x = jax.random.normal(k_x, (batch, NUM_LATENT_FEATURE), jnp.float32)
    params = init_gen_params(k_p, num_features)

    # One-time parameter prep (bf16 cast + lane-dense padding), reused per call.
    prepared, d_out = prepare_gen_params(*params)

    out = gen_forward(x, prepared, d_out)
    out = jax.block_until_ready(out)

    ref = gen_forward_ref(x, *params)   # full-f32 reference
    assert out.shape == (batch, PREDICTED_MISSING_NEIGHBOR_NUM * num_features)
    assert jnp.allclose(out.astype(jnp.float32), ref, atol=4e-2, rtol=4e-2), \
        "mismatch vs JAX reference (small batch)"

    # Exercise the multi-step / ragged-batch path too (block_n=256, grid=2).
    x2 = jax.random.normal(jax.random.PRNGKey(1), (300, NUM_LATENT_FEATURE), jnp.float32)
    out2 = jax.block_until_ready(gen_forward(x2, prepared, d_out))
    ref2 = gen_forward_ref(x2, *params)
    assert out2.shape == ref2.shape
    assert jnp.allclose(out2.astype(jnp.float32), ref2, atol=4e-2, rtol=4e-2), \
        "mismatch vs JAX reference (multi-tile batch)"

    print("KERNEL_OK")
</pallas_src>

<mosaic_0001>
module attributes {stable_mosaic.version = 11 : i64} {
  func.func @_gen_kernel(%arg0: i32, %arg1: memref<16x64xbf16, #tpu.memory_space<vmem>>, %arg2: memref<64x256xbf16, #tpu.memory_space<vmem>>, %arg3: memref<1x256xf32, #tpu.memory_space<vmem>>, %arg4: memref<256x1024xbf16, #tpu.memory_space<vmem>>, %arg5: memref<1x1024xf32, #tpu.memory_space<vmem>>, %arg6: memref<1024x128xbf16, #tpu.memory_space<vmem>>, %arg7: memref<1x128xf32, #tpu.memory_space<vmem>>, %arg8: memref<16x128xbf16, #tpu.memory_space<vmem>>) attributes {dimension_semantics = [#tpu.dimension_semantics<parallel>], iteration_bounds = array<i64: 1>, scalar_prefetch = 0 : i64, scratch_operands = 0 : i64, tpu.core_type = #tpu.core_type<tc>, window_params = [{transform_indices = @transform_0, window_bounds = array<i64: 16, 64>}, {pipeline_mode = #tpu.pipeline_mode<synchronous>, transform_indices = @transform_1, window_bounds = array<i64: 64, 256>}, {pipeline_mode = #tpu.pipeline_mode<synchronous>, transform_indices = @transform_2, window_bounds = array<i64: 1, 256>}, {pipeline_mode = #tpu.pipeline_mode<synchronous>, transform_indices = @transform_3, window_bounds = array<i64: 256, 1024>}, {pipeline_mode = #tpu.pipeline_mode<synchronous>, transform_indices = @transform_4, window_bounds = array<i64: 1, 1024>}, {pipeline_mode = #tpu.pipeline_mode<synchronous>, transform_indices = @transform_5, window_bounds = array<i64: 1024, 128>}, {pipeline_mode = #tpu.pipeline_mode<synchronous>, transform_indices = @transform_6, window_bounds = array<i64: 1, 128>}, {transform_indices = @transform_7, window_bounds = array<i64: 16, 128>}]} {
    %c0 = arith.constant 0 : index
    %c0_0 = arith.constant 0 : index
    %0 = vector.load %arg1[%c0, %c0_0] : memref<16x64xbf16, #tpu.memory_space<vmem>>, vector<16x64xbf16>
    %c0_1 = arith.constant 0 : index
    %c0_2 = arith.constant 0 : index
    %1 = vector.load %arg2[%c0_1, %c0_2] : memref<64x256xbf16, #tpu.memory_space<vmem>>, vector<64x256xbf16>
    %cst = arith.constant dense<0.000000e+00> : vector<16x256xf32>
    %2 = tpu.matmul %0, %1, %cst {dimension_numbers = #tpu.dot_dimension_numbers<[1], [0], [0], [1], [0, 0, 1, 1], [], []>} : vector<16x64xbf16>, vector<64x256xbf16>, vector<16x256xf32> -> vector<16x256xf32>
    %c0_3 = arith.constant 0 : index
    %c0_4 = arith.constant 0 : index
    %3 = vector.load %arg3[%c0_3, %c0_4] : memref<1x256xf32, #tpu.memory_space<vmem>>, vector<1x256xf32>
    %4 = vector.broadcast %3 : vector<1x256xf32> to vector<16x256xf32>
    %5 = arith.addf %2, %4 : vector<16x256xf32>
    %cst_5 = arith.constant 0.000000e+00 : f32
    %6 = vector.broadcast %cst_5 : f32 to vector<16x256xf32>
    %7 = arith.maximumf %5, %6 : vector<16x256xf32>
    %8 = arith.truncf %7 : vector<16x256xf32> to vector<16x256xbf16>
    %c0_6 = arith.constant 0 : index
    %c0_7 = arith.constant 0 : index
    %9 = vector.load %arg4[%c0_6, %c0_7] : memref<256x1024xbf16, #tpu.memory_space<vmem>>, vector<256x1024xbf16>
    %cst_8 = arith.constant dense<0.000000e+00> : vector<16x1024xf32>
    %10 = tpu.matmul %8, %9, %cst_8 {dimension_numbers = #tpu.dot_dimension_numbers<[1], [0], [0], [1], [0, 0, 1, 1], [], []>} : vector<16x256xbf16>, vector<256x1024xbf16>, vector<16x1024xf32> -> vector<16x1024xf32>
    %c0_9 = arith.constant 0 : index
    %c0_10 = arith.constant 0 : index
    %11 = vector.load %arg5[%c0_9, %c0_10] : memref<1x1024xf32, #tpu.memory_space<vmem>>, vector<1x1024xf32>
    %12 = vector.broadcast %11 : vector<1x1024xf32> to vector<16x1024xf32>
    %13 = arith.addf %10, %12 : vector<16x1024xf32>
    %cst_11 = arith.constant 0.000000e+00 : f32
    %14 = vector.broadcast %cst_11 : f32 to vector<16x1024xf32>
    %15 = arith.maximumf %13, %14 : vector<16x1024xf32>
    %16 = arith.truncf %15 : vector<16x1024xf32> to vector<16x1024xbf16>
    %c0_12 = arith.constant 0 : index
    %c0_13 = arith.constant 0 : index
    %17 = vector.load %arg6[%c0_12, %c0_13] : memref<1024x128xbf16, #tpu.memory_space<vmem>>, vector<1024x128xbf16>
    %cst_14 = arith.constant dense<0.000000e+00> : vector<16x128xf32>
    %18 = tpu.matmul %16, %17, %cst_14 {dimension_numbers = #tpu.dot_dimension_numbers<[1], [0], [0], [1], [0, 0, 1, 1], [], []>} : vector<16x1024xbf16>, vector<1024x128xbf16>, vector<16x128xf32> -> vector<16x128xf32>
    %c0_15 = arith.constant 0 : index
    %c0_16 = arith.constant 0 : index
    %19 = vector.load %arg7[%c0_15, %c0_16] : memref<1x128xf32, #tpu.memory_space<vmem>>, vector<1x128xf32>
    %20 = vector.broadcast %19 : vector<1x128xf32> to vector<16x128xf32>
    %21 = arith.addf %18, %20 : vector<16x128xf32>
    %22 = math.tanh %21 : vector<16x128xf32>
    %23 = arith.truncf %22 : vector<16x128xf32> to vector<16x128xbf16>
    %c0_17 = arith.constant 0 : index
    %c0_18 = arith.constant 0 : index
    %24 = vector.load %arg8[%c0_17, %c0_18] : memref<16x128xbf16, #tpu.memory_space<vmem>>, vector<16x128xbf16>
    tpu.vector_store %arg8[%c0_17, %c0_18], %23 {strides = array<i32>} : memref<16x128xbf16, #tpu.memory_space<vmem>>, vector<16x128xbf16>,
    return
  }
  func.func @transform_0(%arg0: i32) -> (i32, i32) {
    %c0_i32 = arith.constant 0 : i32
    %c0_i32_0 = arith.constant 0 : i32
    return %arg0, %c0_i32 : i32, i32
  }
  func.func @transform_1(%arg0: i32) -> (i32, i32) {
    %c0_i32 = arith.constant 0 : i32
    %c0_i32_0 = arith.constant 0 : i32
    %c0_i32_1 = arith.constant 0 : i32
    return %c0_i32, %c0_i32_0 : i32, i32
  }
  func.func @transform_2(%arg0: i32) -> (i32, i32) {
    %c0_i32 = arith.constant 0 : i32
    %c0_i32_0 = arith.constant 0 : i32
    %c0_i32_1 = arith.constant 0 : i32
    return %c0_i32, %c0_i32_0 : i32, i32
  }
  func.func @transform_3(%arg0: i32) -> (i32, i32) {
    %c0_i32 = arith.constant 0 : i32
    %c0_i32_0 = arith.constant 0 : i32
    %c0_i32_1 = arith.constant 0 : i32
    return %c0_i32, %c0_i32_0 : i32, i32
  }
  func.func @transform_4(%arg0: i32) -> (i32, i32) {
    %c0_i32 = arith.constant 0 : i32
    %c0_i32_0 = arith.constant 0 : i32
    %c0_i32_1 = arith.constant 0 : i32
    return %c0_i32, %c0_i32_0 : i32, i32
  }
  func.func @transform_5(%arg0: i32) -> (i32, i32) {
    %c0_i32 = arith.constant 0 : i32
    %c0_i32_0 = arith.constant 0 : i32
    %c0_i32_1 = arith.constant 0 : i32
    return %c0_i32, %c0_i32_0 : i32, i32
  }
  func.func @transform_6(%arg0: i32) -> (i32, i32) {
    %c0_i32 = arith.constant 0 : i32
    %c0_i32_0 = arith.constant 0 : i32
    %c0_i32_1 = arith.constant 0 : i32
    return %c0_i32, %c0_i32_0 : i32, i32
  }
  func.func @transform_7(%arg0: i32) -> (i32, i32) {
    %c0_i32 = arith.constant 0 : i32
    %c0_i32_0 = arith.constant 0 : i32
    return %arg0, %c0_i32 : i32, i32
  }
}

</mosaic_0001>

<bundles_post_ra>
// kernel: _gen_forward_padded.1
= control target key start
LH: loop header
LB: loop body
LE: loop exit
PB: predicated region body
PF: predicated region fallthrough
CT: control target
= control target key end

     0   :  { %12 = vsyncpa [#allocation3], 0  ;;  %s2598_s0 = inlined_call_operand.hbm [shape: bf16[16,64], index: 0, kind: input, shape index: {}]   ;;  %s2599_s1 = inlined_call_operand.hbm [shape: bf16[64,256], index: 1, kind: input, shape index: {}]   ;;  %s2600_s2 = inlined_call_operand.vmem [shape: f32[1,256], index: 2, kind: input, shape index: {}]   ;;  %s2601_s3 = inlined_call_operand.hbm [shape: bf16[256,1024], index: 3, kind: input, shape index: {}]   ;;  %s2602_s4 = inlined_call_operand.vmem [shape: f32[1,1024], index: 4, kind: input, shape index: {}]   ;;  %s2603_s5 = inlined_call_operand.hbm [shape: bf16[1024,128], index: 5, kind: input, shape index: {}]   ;;  %s2604_s6 = inlined_call_operand.vmem [shape: f32[1,128], index: 6, kind: input, shape index: {}]   ;;  %s2605_s7 = inlined_call_operand.hbm [shape: bf16[16,128], index: 7, kind: output, shape index: {}]  }
   0x1   :  { %13 = vsyncpa [#allocation6], 0 }
   0x2   :  { %14 = vsyncpa [#allocation9], 0 }
   0x3   :  { %15 = vsyncpa [#allocation4], 0  ;;  %s2434_s24 = smov [#allocation5]   ;;  %s2316_s28 = scalar_lea.hbm %s2599_s1, 1024 }
   0x4   :  { %s33_s25 = sshll.u32 %s2434_s24, 4  ;;  %p2317_p0 = scmp.ne.s32.totalorder %s2599_s1, %s2316_s28  ;;  %s34_s25 = int_to_ptr.vmem [resolvable:$true] %s33_s25 }
   0x5   :  { %p2320_p1 = scmp.lt.u32.totalorder %s2316_s28, %s2599_s1 }
   0x7   :  { %p2322_p2 = pnand %p2320_p1, %p2317_p0 }
   0x9   :  { %2325 = shalt.err (!%p2322_p2)
}
   0xa   :  { %s2326_s10 = scalar_lea.vmem %s34_s25, 1024  ;;  %p2331_p4 = scmp.lt.s32.totalorder %s34_s25, %s34_s25 }
   0xb   :  { %p2327_p3 = scmp.ne.s32.totalorder %s34_s25, %s2326_s10  ;;  %p2332_p5 = scmp.lt.s32.totalorder %s2326_s10, %s2326_s10 }
   0xd   :  { %p2333_p6 = por %p2332_p5, %p2331_p4 }
   0xf   :  { %p2334_p7 = pnand %p2333_p6, %p2327_p3 }
  0x11   :  { %2337 = shalt.err (!%p2334_p7)
}
  0x12   :  { %s2435_s11 = smov 128   ;;  %s2436_s12 = smov 8  }
  0x13   :  { %39 = dma.hbm_to_vmem [thread:$0]  %s2599_s1, 1024, %s34_s25, [#allocation6], %s2435_s11, %s2435_s11, %s2436_s12  }
  0x14   :  { %s2437_s15 = smov [#allocation2]   ;;  %s2338_s19 = scalar_lea.hbm %s2598_s0, 128 }
  0x15   :  { %s21_s16 = sshll.u32 %s2437_s15, 4  ;;  %p2339_p8 = scmp.ne.s32.totalorder %s2598_s0, %s2338_s19  ;;  %s22_s16 = int_to_ptr.vmem [resolvable:$true] %s21_s16 }
  0x16   :  { %p2342_p9 = scmp.lt.u32.totalorder %s2338_s19, %s2598_s0 }
  0x18   :  { %p2344_p10 = pnand %p2342_p9, %p2339_p8 }
  0x1a   :  { %2347 = shalt.err (!%p2344_p10)
}
  0x1b   :  { %s2348_s24 = scalar_lea.vmem %s22_s16, 128  ;;  %p2353_p12 = scmp.lt.s32.totalorder %s22_s16, %s22_s16 }
  0x1c   :  { %p2349_p11 = scmp.ne.s32.totalorder %s22_s16, %s2348_s24  ;;  %p2354_p13 = scmp.lt.s32.totalorder %s2348_s24, %s2348_s24 }
  0x1e   :  { %p2355_p0 = por %p2354_p13, %p2353_p12 }
  0x20   :  { %p2356_p1 = pnand %p2355_p0, %p2349_p11 }
  0x22   :  { %2359 = shalt.err (!%p2356_p1)
}
  0x23   :  { %s2438_s1 = smov 64   ;;  %s2439_s25 = smov 4  }
  0x24   :  { %27 = dma.hbm_to_vmem [thread:$0]  %s2598_s0, 128, %s22_s16, [#allocation3], %s2438_s1, %s2438_s1, %s2439_s25  }
  0x25   :  { %s2440_s28 = smov [#allocation7]   ;;  %s2360_s9 = scalar_lea.hbm %s2601_s3, 16384 }
  0x26   :  { %s47_s29 = sshll.u32 %s2440_s28, 4  ;;  %p2361_p2 = scmp.ne.s32.totalorder %s2601_s3, %s2360_s9  ;;  %s48_s29 = int_to_ptr.vmem [resolvable:$true] %s47_s29 }
  0x27   :  { %p2364_p3 = scmp.lt.u32.totalorder %s2360_s9, %s2601_s3 }
  0x29   :  { %p2366_p4 = pnand %p2364_p3, %p2361_p2 }
  0x2b   :  { %2369 = shalt.err (!%p2366_p4)
}
  0x2c   :  { %s2370_s14 = scalar_lea.vmem %s48_s29, 16384  ;;  %p2375_p6 = scmp.lt.s32.totalorder %s48_s29, %s48_s29 }
  0x2d   :  { %p2371_p5 = scmp.ne.s32.totalorder %s48_s29, %s2370_s14  ;;  %p2376_p7 = scmp.lt.s32.totalorder %s2370_s14, %s2370_s14 }
  0x2f   :  { %p2377_p8 = por %p2376_p7, %p2375_p6 }
  0x31   :  { %p2378_p9 = pnand %p2377_p8, %p2371_p5 }
  0x33   :  { %2381 = shalt.err (!%p2378_p9)
}
  0x34   :  { %s2441_s0 = smov 512   ;;  %s2442_s15 = smov 32  }
  0x35   :  { %53 = dma.hbm_to_vmem [thread:$0]  %s2601_s3, 16384, %s48_s29, [#allocation6], %s2441_s0, %s2441_s0, %s2442_s15  }
  0x36   :  { %s2443_s18 = smov [#allocation8]   ;;  %s2382_s22 = scalar_lea.hbm %s2603_s5, 8192 }
  0x37   :  { %s61_s19 = sshll.u32 %s2443_s18, 4  ;;  %p2383_p10 = scmp.ne.s32.totalorder %s2603_s5, %s2382_s22  ;;  %s62_s19 = int_to_ptr.vmem [resolvable:$true] %s61_s19 }
  0x38   :  { %p2386_p11 = scmp.lt.u32.totalorder %s2382_s22, %s2603_s5 }
  0x3a   :  { %p2388_p12 = pnand %p2386_p11, %p2383_p10 }
  0x3c   :  { %2391 = shalt.err (!%p2388_p12)
}
  0x3d   :  { %s2392_s28 = scalar_lea.vmem %s62_s19, 8192  ;;  %p2397_p0 = scmp.lt.s32.totalorder %s62_s19, %s62_s19 }
  0x3e   :  { %p2393_p13 = scmp.ne.s32.totalorder %s62_s19, %s2392_s28  ;;  %p2398_p1 = scmp.lt.s32.totalorder %s2392_s28, %s2392_s28 }
  0x40   :  { %p2399_p2 = por %p2398_p1, %p2397_p0 }
  0x42   :  { %p2400_p3 = pnand %p2399_p2, %p2393_p13 }
  0x44   :  { %2403 = shalt.err (!%p2400_p3)
}
  0x45   :  { %67 = dma.hbm_to_vmem [thread:$0]  %s2603_s5, 8192, %s62_s19, [#allocation9], %s2438_s1, %s2438_s1, %s2439_s25  }
  0x46   :  { %2426 = dma.done.wait [#allocation3], 128  }
  0x47   :  { %2427 = vsyncadd [#allocation3], 4294967168 }
  0x48   :  { %2428 = dma.done.wait [#allocation6], 17408  }
  0x49   :  { %2429 = vsyncadd [#allocation6], 4294949888 }
  0x4a   :  { %2430 = dma.done.wait [#allocation9], 8192  }
  0x4b   :  { %2431 = vsyncadd [#allocation9], 4294959104  ;;  %v2444_v0 = vmov 0   ;;  %v2235_v1 = vld [vmem:[#allocation5 + $0x4] ss:$8 sps:$4 sm:$0xff]   ;;  %v2247_v27 = vld [vmem:[#allocation2] sm:$0xff]  }
  0x4c   :  { %186 = vmatprep.mubr.bf16.mxu0 %v2444_v0  ;;  %v2237_v2 = vld [vmem:[#allocation5] ss:$8 sps:$4 sm:$0xff]   ;;  %154 = vmatprep.subr.bf16.mxu0 %v2235_v1  ;;  %v2238_v3 = vld [vmem:[#allocation5 + $0x14] ss:$8 sps:$4 sm:$0xff]   ;;  %v2240_v4 = vld [vmem:[#allocation5 + $0x10] ss:$8 sps:$4 sm:$0xff]  }
  0x4d   :  { %155 = vmatpush1.bf16.msra.mxu0 %v2237_v2  ;;  %v2241_v5 = vld [vmem:[#allocation5 + $0x24] ss:$8 sps:$4 sm:$0xff]   ;;  %v2243_v8 = vld [vmem:[#allocation5 + $0x20] ss:$8 sps:$4 sm:$0xff]   ;;  %v2244_v12 = vld [vmem:[#allocation5 + $0x34] ss:$8 sps:$4 sm:$0xff]  }
  0x4e   :  { %156 = vmatprep.subr.bf16.mxu0 %v2238_v3  ;;  %v203_v6 = vld [vmem:[#allocation7] sm:$0xff]  ;;  %v204_v13 = vld [vmem:[#allocation7 + $0x8] sm:$0xff]  ;;  %v2246_v20 = vld [vmem:[#allocation5 + $0x30] ss:$8 sps:$4 sm:$0xff]   ;;  %vm150_vm0 = vcmask 523264  }
  0x4f   :  { %v207_v7 = vld [vmem:[#allocation7 + $0x20] sm:$0xff]  ;;  %v208_v15 = vld [vmem:[#allocation7 + $0x28] sm:$0xff] }
  0x50   :  { %v1934_v9 = vcombine.high %v203_v6, %v207_v7  ;;  %v1933_v10 = vcombine.low %v203_v6, %v207_v7  ;;  %v211_v11 = vld [vmem:[#allocation7 + $0x40] sm:$0xff]  ;;  %v1936_v22 = vcombine.high %v204_v13, %v208_v15  ;;  %v212_v25 = vld [vmem:[#allocation7 + $0x48] sm:$0xff]  ;;  %v1935_v29 = vcombine.low %v204_v13, %v208_v15 }
  0x51   :  { %157 = vmatpush1.bf16.msra.mxu0 %v2240_v4  ;;  %v215_v14 = vld [vmem:[#allocation7 + $0x60] sm:$0xff]  ;;  %v216_v26 = vld [vmem:[#allocation7 + $0x68] sm:$0xff] }
  0x52   :  { %158 = vmatprep.subr.bf16.mxu0 %v2241_v5  ;;  %1013 = vmatprep.subr.bf16.mxu1 %v1934_v9  ;;  %v1942_v16 = vcombine.high %v211_v11, %v215_v14  ;;  %v219_v17 = vld [vmem:[#allocation7 + $0x80] sm:$0xff]  ;;  %v1941_v19 = vcombine.low %v211_v11, %v215_v14  ;;  %v1944_v31 = vcombine.high %v212_v25, %v216_v26  ;;  %v220_v34 = vld [vmem:[#allocation7 + $0x88] sm:$0xff] }
  0x53   :  { %v223_v18 = vld [vmem:[#allocation7 + $0xa0] sm:$0xff]  ;;  %1014 = vmatpush1.bf16.msra.mxu1 %v1933_v10  ;;  %v224_v35 = vld [vmem:[#allocation7 + $0xa8] sm:$0xff]  ;;  %v1943_v37 = vcombine.low %v212_v25, %v216_v26 }
  0x54   :  { %1015 = vmatprep.subr.bf16.mxu1 %v1942_v16  ;;  %v1950_v21 = vcombine.high %v219_v17, %v223_v18  ;;  %v227_v23 = vld [vmem:[#allocation7 + $0xc0] sm:$0xff]  ;;  %v1949_v28 = vcombine.low %v219_v17, %v223_v18  ;;  %v1952_v39 = vcombine.high %v220_v34, %v224_v35  ;;  %v228_v42 = vld [vmem:[#allocation7 + $0xc8] sm:$0xff]  ;;  %v1951_v45 = vcombine.low %v220_v34, %v224_v35 }
  0x55   :  { %159 = vmatpush1.bf16.msra.mxu0 %v2243_v8  ;;  %v231_v24 = vld [vmem:[#allocation7 + $0xe0] sm:$0xff]  ;;  %v232_v43 = vld [vmem:[#allocation7 + $0xe8] sm:$0xff] }
  0x56   :  { %160 = vmatprep.subr.bf16.mxu0 %v2244_v12  ;;  %v1958_v30 = vcombine.high %v227_v23, %v231_v24  ;;  %v235_v32 = vld [vmem:[#allocation7 + $0x100] sm:$0xff]  ;;  %v1957_v36 = vcombine.low %v227_v23, %v231_v24  ;;  %v1960_v47 = vcombine.high %v228_v42, %v232_v43  ;;  %v236_v48 = vld [vmem:[#allocation7 + $0x108] sm:$0xff]  ;;  %v1959_v55 = vcombine.low %v228_v42, %v232_v43 }
  0x57   :  { %1016 = vmatpush1.bf16.msra.mxu1 %v1941_v19  ;;  %v239_v33 = vld [vmem:[#allocation7 + $0x120] sm:$0xff]  ;;  %v240_v51 = vld [vmem:[#allocation7 + $0x128] sm:$0xff] }
  0x58   :  { %1017 = vmatprep.subr.bf16.mxu1 %v1950_v21  ;;  %v1966_v38 = vcombine.high %v235_v32, %v239_v33  ;;  %v243_v40 = vld [vmem:[#allocation7 + $0x140] sm:$0xff]  ;;  %v1965_v44 = vcombine.low %v235_v32, %v239_v33  ;;  %v244_v56 = vld [vmem:[#allocation7 + $0x148] sm:$0xff]  ;;  %v1968_v59 = vcombine.high %v236_v48, %v240_v51  ;;  %v1967_v63 = vcombine.low %v236_v48, %v240_v51 }
  0x59   :  { %161 = vmatpush1.bf16.msra.mxu0 %v2246_v20  ;;  %v247_v41 = vld [vmem:[#allocation7 + $0x160] sm:$0xff]  ;;  %v248_v57 = vld [vmem:[#allocation7 + $0x168] sm:$0xff] }
  0x5a   :  { %1056 = vmatprep.subr.bf16.mxu0 %v1936_v22  ;;  %v1974_v46 = vcombine.high %v243_v40, %v247_v41  ;;  %v251_v49 = vld [vmem:[#allocation7 + $0x180] sm:$0xff]  ;;  %v1973_v52 = vcombine.low %v243_v40, %v247_v41  ;;  %v252_v0 = vld [vmem:[#allocation7 + $0x188] sm:$0xff]  ;;  %v1976_v3 = vcombine.high %v244_v56, %v248_v57  ;;  %v1975_v7 = vcombine.low %v244_v56, %v248_v57 }
  0x5b   :  { %1018 = vmatpush1.bf16.msra.mxu1 %v1949_v28  ;;  %v255_v50 = vld [vmem:[#allocation7 + $0x1a0] sm:$0xff]  ;;  %v256_v1 = vld [vmem:[#allocation7 + $0x1a8] sm:$0xff] }
  0x5c   :  { %1932 = vmatmul.mubr.msk.bf16.vlgmr.msra.gmra.mrb[0].mxu0 %vm150_vm0, %v2247_v27  ;;  %1019 = vmatprep.subr.bf16.mxu1 %v1958_v30  ;;  %v259_v53 = vld [vmem:[#allocation7 + $0x1c0] sm:$0xff]  ;;  %v1982_v58 = vcombine.high %v251_v49, %v255_v50  ;;  %v1981_v60 = vcombine.low %v251_v49, %v255_v50  ;;  %v260_v8 = vld [vmem:[#allocation7 + $0x1c8] sm:$0xff]  ;;  %v1984_v11 = vcombine.high %v252_v0, %v256_v1 }
  0x5d   :  { %1057 = vmatpush1.bf16.msra.mxu0 %v1935_v29  ;;  %v263_v54 = vld [vmem:[#allocation7 + $0x1e0] sm:$0xff]  ;;  %v264_v9 = vld [vmem:[#allocation7 + $0x1e8] sm:$0xff]  ;;  %v1983_v15 = vcombine.low %v252_v0, %v256_v1 }
  0x5e   :  { %1058 = vmatprep.subr.bf16.mxu0 %v1944_v31  ;;  %v267_v61 = vld [vmem:[#allocation7 + $0x200] sm:$0xff]  ;;  %v1990_v2 = vcombine.high %v259_v53, %v263_v54  ;;  %v1989_v4 = vcombine.low %v259_v53, %v263_v54  ;;  %v268_v16 = vld [vmem:[#allocation7 + $0x208] sm:$0xff]  ;;  %v1992_v19 = vcombine.high %v260_v8, %v264_v9  ;;  %v1991_v23 = vcombine.low %v260_v8, %v264_v9 }
  0x5f   :  { %1020 = vmatpush1.bf16.msra.mxu1 %v1957_v36  ;;  %v271_v62 = vld [vmem:[#allocation7 + $0x220] sm:$0xff]  ;;  %v272_v17 = vld [vmem:[#allocation7 + $0x228] sm:$0xff] }
  0x60   :  { %1021 = vmatprep.subr.bf16.mxu1 %v1966_v38  ;;  %v275_v5 = vld [vmem:[#allocation7 + $0x240] sm:$0xff]  ;;  %v1998_v10 = vcombine.high %v267_v61, %v271_v62  ;;  %v1997_v12 = vcombine.low %v267_v61, %v271_v62  ;;  %v276_v24 = vld [vmem:[#allocation7 + $0x248] sm:$0xff]  ;;  %v2000_v27 = vcombine.high %v268_v16, %v272_v17  ;;  %v1999_v31 = vcombine.low %v268_v16, %v272_v17 }
  0x61   :  { %1059 = vmatpush1.bf16.msra.mxu0 %v1943_v37  ;;  %v279_v6 = vld [vmem:[#allocation7 + $0x260] sm:$0xff]  ;;  %v280_v25 = vld [vmem:[#allocation7 + $0x268] sm:$0xff] }
  0x62   :  { %1060 = vmatprep.subr.bf16.mxu0 %v1952_v39  ;;  %v283_v13 = vld [vmem:[#allocation7 + $0x280] sm:$0xff]  ;;  %v2006_v18 = vcombine.high %v275_v5, %v279_v6  ;;  %v2005_v20 = vcombine.low %v275_v5, %v279_v6  ;;  %v284_v32 = vld [vmem:[#allocation7 + $0x288] sm:$0xff]  ;;  %v2008_v35 = vcombine.high %v276_v24, %v280_v25  ;;  %v2007_v39 = vcombine.low %v276_v24, %v280_v25 }
  0x63   :  { %1022 = vmatpush1.bf16.msra.mxu1 %v1965_v44  ;;  %v287_v14 = vld [vmem:[#allocation7 + $0x2a0] sm:$0xff]  ;;  %v288_v33 = vld [vmem:[#allocation7 + $0x2a8] sm:$0xff] }
  0x64   :  { %1023 = vmatprep.subr.bf16.mxu1 %v1974_v46  ;;  %v291_v21 = vld [vmem:[#allocation7 + $0x2c0] sm:$0xff]  ;;  %v2014_v26 = vcombine.high %v283_v13, %v287_v14  ;;  %v2013_v28 = vcombine.low %v283_v13, %v287_v14  ;;  %v292_v40 = vld [vmem:[#allocation7 + $0x2c8] sm:$0xff]  ;;  %v2016_v43 = vcombine.high %v284_v32, %v288_v33  ;;  %v210_v14 = vld [vmem:[#allocation7 + $0x38] sm:$0xff] }
  0x65   :  { %1061 = vmatpush1.bf16.msra.mxu0 %v1951_v45  ;;  %v295_v22 = vld [vmem:[#allocation7 + $0x2e0] sm:$0xff]  ;;  %v296_v41 = vld [vmem:[#allocation7 + $0x2e8] sm:$0xff]  ;;  %v2015_v45 = vcombine.low %v284_v32, %v288_v33 }
  0x66   :  { %1062 = vmatprep.subr.bf16.mxu0 %v1960_v47  ;;  %v299_v29 = vld [vmem:[#allocation7 + $0x300] sm:$0xff]  ;;  %v2022_v34 = vcombine.high %v291_v21, %v295_v22  ;;  %v2021_v36 = vcombine.low %v291_v21, %v295_v22  ;;  %v300_v46 = vld [vmem:[#allocation7 + $0x308] sm:$0xff]  ;;  %v2024_v49 = vcombine.high %v292_v40, %v296_v41  ;;  %v2023_v51 = vcombine.low %v292_v40, %v296_v41  ;;  %v93_v21 = vld [vmem:[%s2600_s2] sm:$0x3] }
  0x67   :  { %1024 = vmatpush1.bf16.msra.mxu1 %v1973_v52  ;;  %v303_v30 = vld [vmem:[#allocation7 + $0x320] sm:$0xff]  ;;  %v304_v47 = vld [vmem:[#allocation7 + $0x328] sm:$0xff]  ;;  %v214_v40 = vld [vmem:[#allocation7 + $0x58] sm:$0xff] }
  0x68   :  { %1025 = vmatprep.subr.bf16.mxu1 %v1982_v58  ;;  %v307_v37 = vld [vmem:[#allocation7 + $0x340] sm:$0xff]  ;;  %v2030_v42 = vcombine.high %v299_v29, %v303_v30  ;;  %v2029_v44 = vcombine.low %v299_v29, %v303_v30  ;;  %v308_v52 = vld [vmem:[#allocation7 + $0x348] sm:$0xff]  ;;  %v2032_v54 = vcombine.high %v300_v46, %v304_v47  ;;  %v218_v41 = vld [vmem:[#allocation7 + $0x78] sm:$0xff] }
  0x69   :  { %1063 = vmatpush1.bf16.msra.mxu0 %v1959_v55  ;;  %v311_v38 = vld [vmem:[#allocation7 + $0x360] sm:$0xff]  ;;  %v312_v53 = vld [vmem:[#allocation7 + $0x368] sm:$0xff]  ;;  %v2031_v55 = vcombine.low %v300_v46, %v304_v47  ;;  %v225_v46 = vld [vmem:[#allocation7 + $0xb0] sm:$0xff] }
  0x6a   :  { %1064 = vmatprep.subr.bf16.mxu0 %v1968_v59  ;;  %v2038_v48 = vcombine.high %v307_v37, %v311_v38  ;;  %v2037_v50 = vcombine.low %v307_v37, %v311_v38  ;;  %v2040_v56 = vcombine.high %v308_v52, %v312_v53  ;;  %v2039_v57 = vcombine.low %v308_v52, %v312_v53  ;;  %v315_v58 = vld [vmem:[#allocation7 + $0x380] sm:$0xff]  ;;  %v320_v62 = vld [vmem:[#allocation7 + $0x3a8] sm:$0xff]  ;;  %v213_v37 = vld [vmem:[#allocation7 + $0x50] sm:$0xff] }
  0x6b   :  { %1026 = vmatpush1.bf16.msra.mxu1 %v1981_v60  ;;  %v319_v59 = vld [vmem:[#allocation7 + $0x3a0] sm:$0xff]  ;;  %v316_v60 = vld [vmem:[#allocation7 + $0x388] sm:$0xff]  ;;  %v222_v47 = vld [vmem:[#allocation7 + $0x98] sm:$0xff] }
  0x6c   :  { %1027 = vmatprep.subr.bf16.mxu1 %v1990_v2  ;;  %v2046_v61 = vcombine.high %v315_v58, %v319_v59  ;;  %v2048_v0 = vcombine.high %v316_v60, %v320_v62  ;;  %v2045_v1 = vcombine.low %v315_v58, %v319_v59  ;;  %v323_v2 = vld [vmem:[#allocation7 + $0x3c0] sm:$0xff]  ;;  %v328_v6 = vld [vmem:[#allocation7 + $0x3e8] sm:$0xff]  ;;  %v229_v53 = vld [vmem:[#allocation7 + $0xd0] sm:$0xff] }
  0x6d   :  { %1065 = vmatpush1.bf16.msra.mxu0 %v1967_v63  ;;  %v2047_v63 = vcombine.low %v316_v60, %v320_v62  ;;  %v241_v62 = vld [vmem:[#allocation7 + $0x130] sm:$0xff] }
  0x6e   :  { %1066 = vmatprep.subr.bf16.mxu0 %v1976_v3  ;;  %v327_v3 = vld [vmem:[#allocation7 + $0x3e0] sm:$0xff] }
  0x6f   :  { %1028 = vmatpush1.bf16.msra.mxu1 %v1989_v4  ;;  %v324_v4 = vld [vmem:[#allocation7 + $0x3c8] sm:$0xff]  ;;  %v2054_v5 = vcombine.high %v323_v2, %v327_v3  ;;  %v2053_v9 = vcombine.low %v323_v2, %v327_v3 }
  0x70   :  { %1029 = vmatprep.subr.bf16.mxu1 %v1998_v10  ;;  %v2056_v8 = vcombine.high %v324_v4, %v328_v6  ;;  %v205_v10 = vld [vmem:[#allocation7 + $0x10] sm:$0xff] }
  0x71   :  { %1067 = vmatpush1.bf16.msra.mxu0 %v1975_v7  ;;  %v2055_v7 = vcombine.low %v324_v4, %v328_v6  ;;  %v249_v6 = vld [vmem:[#allocation7 + $0x170] sm:$0xff] }
  0x72   :  { %1068 = vmatprep.subr.bf16.mxu0 %v1984_v11  ;;  %v209_v11 = vld [vmem:[#allocation7 + $0x30] sm:$0xff] }
  0x73   :  { %1030 = vmatpush1.bf16.msra.mxu1 %v1997_v12  ;;  %v206_v12 = vld [vmem:[#allocation7 + $0x18] sm:$0xff]  ;;  %v1938_v13 = vcombine.high %v205_v10, %v209_v11 }
  0x74   :  { %1031 = vmatprep.subr.bf16.mxu1 %v2006_v18  ;;  %v1939_v16 = vcombine.low %v206_v12, %v210_v14  ;;  %v1940_v17 = vcombine.high %v206_v12, %v210_v14  ;;  %v95_v18 = vlaneseq  ;;  %v257_v14 = vld [vmem:[#allocation7 + $0x1b0] sm:$0xff] }
  0x75   :  { %1069 = vmatpush1.bf16.msra.mxu0 %v1983_v15  ;;  %v1937_v15 = vcombine.low %v205_v10, %v209_v11 }
  0x76   :  { %1070 = vmatprep.subr.bf16.mxu0 %v1992_v19  ;;  %v2540_v19 = vshrl.u32 %v95_v18, 7 }
  0x77   :  { %1032 = vmatpush1.bf16.msra.mxu1 %v2005_v20 }
  0x78   :  { %1033 = vmatprep.subr.bf16.mxu1 %v2014_v26  ;;  %v97_v20 = vsub.s32 0, %v2540_v19  ;;  %v101_v22 = vsub.s32 1, %v2540_v19 }
  0x79   :  { %1071 = vmatpush1.bf16.msra.mxu0 %v1991_v23 }
  0x7a   :  { %1072 = vmatprep.subr.bf16.mxu0 %v2000_v27  ;;  %v98_v23 = vrot.slane %v93_v21, %v97_v20  ;;  %v102_v24 = vrot.slane %v93_v21, %v101_v22 }
  0x7b   :  { %1034 = vmatpush1.bf16.msra.mxu1 %v2013_v28 }
  0x7c   :  { %1035 = vmatprep.subr.bf16.mxu1 %v2022_v34 }
  0x7d   :  { %1073 = vmatpush1.bf16.msra.mxu0 %v1999_v31 }
  0x7e   :  { %1074 = vmatprep.subr.bf16.mxu0 %v2008_v35 }
  0x7f   :  { %1036 = vmatpush1.bf16.msra.mxu1 %v2021_v36 }
  0x80   :  { %1037 = vmatprep.subr.bf16.mxu1 %v2030_v42 }
  0x81   :  { %1075 = vmatpush1.bf16.msra.mxu0 %v2007_v39  ;;  %v217_v39 = vld [vmem:[#allocation7 + $0x70] sm:$0xff] }
  0x82   :  { %1076 = vmatprep.subr.bf16.mxu0 %v2016_v43  ;;  %v221_v43 = vld [vmem:[#allocation7 + $0x90] sm:$0xff] }
  0x83   :  { %1038 = vmatpush1.bf16.msra.mxu1 %v2029_v44  ;;  %v1946_v44 = vcombine.high %v213_v37, %v217_v39 }
  0x84   :  { %1039 = vmatprep.subr.bf16.mxu1 %v2038_v48  ;;  %v226_v48 = vld [vmem:[#allocation7 + $0xb8] sm:$0xff] }
  0x85   :  { %1077 = vmatpush1.bf16.msra.mxu0 %v2015_v45  ;;  %v1948_v45 = vcombine.high %v214_v40, %v218_v41  ;;  %v1956_v52 = vcombine.high %v222_v47, %v226_v48  ;;  %v1955_v58 = vcombine.low %v222_v47, %v226_v48 }
  0x86   :  { %1078 = vmatprep.subr.bf16.mxu0 %v2024_v49  ;;  %v1945_v49 = vcombine.low %v213_v37, %v217_v39 }
  0x87   :  { %1040 = vmatpush1.bf16.msra.mxu1 %v2037_v50  ;;  %v1947_v50 = vcombine.low %v214_v40, %v218_v41  ;;  %v277_v41 = vld [vmem:[#allocation7 + $0x250] sm:$0xff] }
  0x88   :  { %1041 = vmatprep.subr.bf16.mxu1 %v2046_v61  ;;  %v237_v61 = vld [vmem:[#allocation7 + $0x110] sm:$0xff] }
  0x89   :  { %1079 = vmatpush1.bf16.msra.mxu0 %v2023_v51  ;;  %v1954_v51 = vcombine.high %v221_v43, %v225_v46  ;;  %v1970_v3 = vcombine.high %v237_v61, %v241_v62 }
  0x8a   :  { %1080 = vmatprep.subr.bf16.mxu0 %v2032_v54  ;;  %v233_v54 = vld [vmem:[#allocation7 + $0xf0] sm:$0xff] }
  0x8b   :  { %1042 = vmatpush1.bf16.msra.mxu1 %v2045_v1  ;;  %v1962_v59 = vcombine.high %v229_v53, %v233_v54  ;;  %v1961_v1 = vcombine.low %v229_v53, %v233_v54 }
  0x8c   :  { %1043 = vmatprep.subr.bf16.mxu1 %v2054_v5  ;;  %v245_v5 = vld [vmem:[#allocation7 + $0x150] sm:$0xff] }
  0x8d   :  { %1081 = vmatpush1.bf16.msra.mxu0 %v2031_v55  ;;  %v230_v55 = vld [vmem:[#allocation7 + $0xd8] sm:$0xff]  ;;  %v1978_v11 = vcombine.high %v245_v5, %v249_v6 }
  0x8e   :  { %1082 = vmatprep.subr.bf16.mxu0 %v2040_v56  ;;  %v234_v56 = vld [vmem:[#allocation7 + $0xf8] sm:$0xff] }
  0x8f   :  { %1044 = vmatpush1.bf16.msra.mxu1 %v2053_v9  ;;  %v1964_v60 = vcombine.high %v230_v55, %v234_v56  ;;  %v1963_v2 = vcombine.low %v230_v55, %v234_v56  ;;  %v1969_v9 = vcombine.low %v237_v61, %v241_v62 }
  0x90   :  { %1099 = vmatprep.subr.bf16.mxu1 %v1938_v13  ;;  %v253_v13 = vld [vmem:[#allocation7 + $0x190] sm:$0xff] }
  0x91   :  { %1083 = vmatpush1.bf16.msra.mxu0 %v2039_v57  ;;  %v1953_v57 = vcombine.low %v221_v43, %v225_v46  ;;  %v1986_v21 = vcombine.high %v253_v13, %v257_v14  ;;  %v278_v43 = vld [vmem:[#allocation7 + $0x258] sm:$0xff] }
  0x92   :  { %1084 = vmatprep.subr.bf16.mxu0 %v2048_v0  ;;  %v242_v0 = vld [vmem:[#allocation7 + $0x138] sm:$0xff] }
  0x95   :  { %1085 = vmatpush1.bf16.msra.mxu0 %v2047_v63  ;;  %v238_v63 = vld [vmem:[#allocation7 + $0x118] sm:$0xff] }
  0x96   :  { %1086 = vmatprep.subr.bf16.mxu0 %v2056_v8  ;;  %v1972_v4 = vcombine.high %v238_v63, %v242_v0  ;;  %v250_v8 = vld [vmem:[#allocation7 + $0x178] sm:$0xff]  ;;  %v1971_v10 = vcombine.low %v238_v63, %v242_v0 }
  0x99   :  { %1087 = vmatpush1.bf16.msra.mxu0 %v2055_v7  ;;  %v246_v7 = vld [vmem:[#allocation7 + $0x158] sm:$0xff] }
  0x9a   :  { %1142 = vmatprep.subr.bf16.mxu0 %v1940_v17  ;;  %v1980_v12 = vcombine.high %v246_v7, %v250_v8  ;;  %v1977_v17 = vcombine.low %v245_v5, %v249_v6  ;;  %v1979_v18 = vcombine.low %v246_v7, %v250_v8 }
 0x12f   :  { %v188_v25 = vpop.f32.mrb[0].mxu0 }
 0x130   :  { %v189_v26 = vadd.f32 %v188_v25, %v98_v23  ;;  %v190_v27 = vpop.f32.mrb[1].mxu0  ;;  %v265_v25 = vld [vmem:[#allocation7 + $0x1f0] sm:$0xff] }
 0x131   :  { %v191_v28 = vadd.f32 %v190_v27, %v102_v24  ;;  %v192_v29 = vpop.f32.mrb[2].mxu0  ;;  %v266_v27 = vld [vmem:[#allocation7 + $0x1f8] sm:$0xff] }
 0x132   :  { %v193_v30 = vadd.f32 %v192_v29, %v98_v23  ;;  %v194_v31 = vpop.f32.mrb[3].mxu0  ;;  %v197_v33 = vmax.f32 %v189_v26, 0.0  ;;  %v262_v26 = vld [vmem:[#allocation7 + $0x1d8] sm:$0xff] }
 0x133   :  { %v195_v32 = vadd.f32 %v194_v31, %v102_v24  ;;  %v198_v35 = vmax.f32 %v191_v28, 0.0  ;;  %v261_v24 = vld [vmem:[#allocation7 + $0x1d0] sm:$0xff]  ;;  %v1985_v28 = vcombine.low %v253_v13, %v257_v14  ;;  %v1996_v31 = vcombine.high %v262_v26, %v266_v27 }
 0x134   :  { %v199_v34 = vmax.f32 %v193_v30, 0.0  ;;  %v1994_v30 = vcombine.high %v261_v24, %v265_v25  ;;  %v1995_v37 = vcombine.low %v262_v26, %v266_v27 }
 0x135   :  { %v200_v36 = vmax.f32 %v195_v32, 0.0  ;;  %v269_v32 = vld [vmem:[#allocation7 + $0x210] sm:$0xff] }
 0x136   :  { %v2551_v38 = vpack.c.bf16 %v199_v34, %v197_v33  ;;  %v273_v33 = vld [vmem:[#allocation7 + $0x230] sm:$0xff]  ;;  %v270_v34 = vld [vmem:[#allocation7 + $0x218] sm:$0xff] }
 0x137   :  { %v202_v42 = vpack.c.bf16 %v200_v36, %v198_v35  ;;  %v274_v35 = vld [vmem:[#allocation7 + $0x238] sm:$0xff]  ;;  %v1993_v36 = vcombine.low %v261_v24, %v265_v25  ;;  %v2002_v39 = vcombine.high %v269_v32, %v273_v33 }
 0x138   :  { %v2004_v40 = vcombine.high %v270_v34, %v274_v35  ;;  %v2003_v46 = vcombine.low %v270_v34, %v274_v35 }
 0x139   :  { %1045 = vmatprep.mubr.bf16.mxu1 %v202_v42  ;;  %1088 = vmatprep.mubr.bf16.mxu0 %v202_v42 }
 0x13a   :  { %1046 = vmatmul.mubr.bf16.vlgmr.msra.gmra.mrb[0].mxu1 %v2551_v38  ;;  %1089 = vmatmul.mubr.bf16.vlgmr.msra.gmra.mrb[4].mxu0 %v2551_v38 }
 0x13b   :  { %1100 = vmatpush1.bf16.msra.mxu1 %v1937_v15  ;;  %1143 = vmatpush1.bf16.msra.mxu0 %v1939_v16  ;;  %v254_v15 = vld [vmem:[#allocation7 + $0x198] sm:$0xff] }
 0x13c   :  { %1131 = vmatprep.mubr.bf16.mxu1 %v202_v42  ;;  %1174 = vmatprep.mubr.bf16.mxu0 %v202_v42  ;;  %v258_v16 = vld [vmem:[#allocation7 + $0x1b8] sm:$0xff]  ;;  %v281_v42 = vld [vmem:[#allocation7 + $0x270] sm:$0xff] }
 0x13d   :  { %1101 = vmatprep.subr.bf16.mxu1 %v1946_v44  ;;  %1144 = vmatprep.subr.bf16.mxu0 %v1948_v45  ;;  %v1988_v23 = vcombine.high %v254_v15, %v258_v16  ;;  %v1987_v29 = vcombine.low %v254_v15, %v258_v16  ;;  %v282_v44 = vld [vmem:[#allocation7 + $0x278] sm:$0xff]  ;;  %v2001_v45 = vcombine.low %v269_v32, %v273_v33 }
 0x13e   :  { %v2010_v47 = vcombine.high %v277_v41, %v281_v42  ;;  %v2012_v48 = vcombine.high %v278_v43, %v282_v44  ;;  %v2009_v53 = vcombine.low %v277_v41, %v281_v42  ;;  %v2011_v54 = vcombine.low %v278_v43, %v282_v44  ;;  %v2250_v41 = vld [vmem:[#allocation8] sm:$0xff]   ;;  %v2252_v43 = vld [vmem:[#allocation8 + $0x48] sm:$0xff]  }
 0x13f   :  { %1102 = vmatpush1.bf16.msra.mxu1 %v1945_v49  ;;  %1145 = vmatpush1.bf16.msra.mxu0 %v1947_v50  ;;  %v285_v49 = vld [vmem:[#allocation7 + $0x290] sm:$0xff]  ;;  %v2251_v42 = vld [vmem:[#allocation8 + $0x80] sm:$0xff]   ;;  %v2253_v44 = vld [vmem:[#allocation8 + $0xc8] sm:$0xff]  }
 0x140   :  { %1103 = vmatprep.subr.bf16.mxu1 %v1954_v51  ;;  %1146 = vmatprep.subr.bf16.mxu0 %v1956_v52  ;;  %v289_v50 = vld [vmem:[#allocation7 + $0x2b0] sm:$0xff]  ;;  %v286_v51 = vld [vmem:[#allocation7 + $0x298] sm:$0xff] }
 0x141   :  { %v290_v52 = vld [vmem:[#allocation7 + $0x2b8] sm:$0xff]  ;;  %v2018_v55 = vcombine.high %v285_v49, %v289_v50  ;;  %v2017_v61 = vcombine.low %v285_v49, %v289_v50  ;;  %v2258_v49 = vld [vmem:[#allocation8 + $0x10] sm:$0xff]  }
 0x142   :  { %v2020_v56 = vcombine.high %v286_v51, %v290_v52  ;;  %v2019_v62 = vcombine.low %v286_v51, %v290_v52  ;;  %v2259_v50 = vld [vmem:[#allocation8 + $0x90] sm:$0xff]   ;;  %v2260_v51 = vld [vmem:[#allocation8 + $0x58] sm:$0xff]  }
 0x143   :  { %1104 = vmatpush1.bf16.msra.mxu1 %v1953_v57  ;;  %1147 = vmatpush1.bf16.msra.mxu0 %v1955_v58  ;;  %v293_v57 = vld [vmem:[#allocation7 + $0x2d0] sm:$0xff]  ;;  %v2261_v52 = vld [vmem:[#allocation8 + $0xd8] sm:$0xff]  }
 0x144   :  { %1105 = vmatprep.subr.bf16.mxu1 %v1962_v59  ;;  %1148 = vmatprep.subr.bf16.mxu0 %v1964_v60  ;;  %v297_v58 = vld [vmem:[#allocation7 + $0x2f0] sm:$0xff]  ;;  %v294_v59 = vld [vmem:[#allocation7 + $0x2d8] sm:$0xff] }
 0x145   :  { %v298_v60 = vld [vmem:[#allocation7 + $0x2f8] sm:$0xff]  ;;  %v2026_v63 = vcombine.high %v293_v57, %v297_v58  ;;  %v2025_v5 = vcombine.low %v293_v57, %v297_v58  ;;  %v2267_v57 = vld [vmem:[#allocation8 + $0xa0] sm:$0xff]   ;;  %v2268_v58 = vld [vmem:[#allocation8 + $0x68] sm:$0xff]  }
 0x146   :  { %v2028_v0 = vcombine.high %v294_v59, %v298_v60  ;;  %v2027_v6 = vcombine.low %v294_v59, %v298_v60  ;;  %v2269_v59 = vld [vmem:[#allocation8 + $0xe8] sm:$0xff]  }
 0x147   :  { %1106 = vmatpush1.bf16.msra.mxu1 %v1961_v1  ;;  %1149 = vmatpush1.bf16.msra.mxu0 %v1963_v2  ;;  %v301_v1 = vld [vmem:[#allocation7 + $0x310] sm:$0xff]  ;;  %v2270_v60 = vld [vmem:[#allocation8 + $0x28] sm:$0xff]  }
 0x148   :  { %1107 = vmatprep.subr.bf16.mxu1 %v1970_v3  ;;  %1150 = vmatprep.subr.bf16.mxu0 %v1972_v4  ;;  %v305_v2 = vld [vmem:[#allocation7 + $0x330] sm:$0xff]  ;;  %v302_v3 = vld [vmem:[#allocation7 + $0x318] sm:$0xff] }
 0x149   :  { %v306_v4 = vld [vmem:[#allocation7 + $0x338] sm:$0xff]  ;;  %v2034_v7 = vcombine.high %v301_v1, %v305_v2  ;;  %v2033_v13 = vcombine.low %v301_v1, %v305_v2  ;;  %v2275_v1 = vld [vmem:[#allocation8 + $0xb0] sm:$0xff]  }
 0x14a   :  { %v2036_v8 = vcombine.high %v302_v3, %v306_v4  ;;  %v2035_v14 = vcombine.low %v302_v3, %v306_v4  ;;  %v2276_v2 = vld [vmem:[#allocation8 + $0x78] sm:$0xff]  }
 0x14b   :  { %1108 = vmatpush1.bf16.msra.mxu1 %v1969_v9  ;;  %1151 = vmatpush1.bf16.msra.mxu0 %v1971_v10  ;;  %v309_v9 = vld [vmem:[#allocation7 + $0x350] sm:$0xff]  ;;  %v2277_v3 = vld [vmem:[#allocation8 + $0xf8] sm:$0xff]  }
 0x14c   :  { %1109 = vmatprep.subr.bf16.mxu1 %v1978_v11  ;;  %1152 = vmatprep.subr.bf16.mxu0 %v1980_v12  ;;  %v313_v10 = vld [vmem:[#allocation7 + $0x370] sm:$0xff]  ;;  %v310_v11 = vld [vmem:[#allocation7 + $0x358] sm:$0xff] }
 0x14d   :  { %v314_v12 = vld [vmem:[#allocation7 + $0x378] sm:$0xff]  ;;  %v2042_v15 = vcombine.high %v309_v9, %v313_v10  ;;  %v2041_v24 = vcombine.low %v309_v9, %v313_v10  ;;  %v347_v10 = vsub.s32 3, %v2540_v19 }
 0x14e   :  { %v2044_v16 = vcombine.high %v310_v11, %v314_v12  ;;  %v2043_v25 = vcombine.low %v310_v11, %v314_v12  ;;  %v2278_v4 = vld [vmem:[#allocation8 + $0x38] sm:$0xff]  }
 0x14f   :  { %1110 = vmatpush1.bf16.msra.mxu1 %v1977_v17  ;;  %1153 = vmatpush1.bf16.msra.mxu0 %v1979_v18  ;;  %v317_v17 = vld [vmem:[#allocation7 + $0x390] sm:$0xff]  ;;  %v2561_v9 = vld [vmem:[%s2602_s4] sm:$0xff] }
 0x150   :  { %1111 = vmatprep.subr.bf16.mxu1 %v1986_v21  ;;  %1154 = vmatprep.subr.bf16.mxu0 %v1988_v23  ;;  %v321_v18 = vld [vmem:[#allocation7 + $0x3b0] sm:$0xff]  ;;  %v318_v21 = vld [vmem:[#allocation7 + $0x398] sm:$0xff]  ;;  %v336_v11 = vrot.slane %v2561_v9, %v97_v20 }
 0x151   :  { %v322_v23 = vld [vmem:[#allocation7 + $0x3b8] sm:$0xff]  ;;  %v2050_v26 = vcombine.high %v317_v17, %v321_v18  ;;  %v2049_v32 = vcombine.low %v317_v17, %v321_v18 }
 0x152   :  { %v2052_v27 = vcombine.high %v318_v21, %v322_v23  ;;  %v2051_v33 = vcombine.low %v318_v21, %v322_v23 }
 0x153   :  { %1112 = vmatpush1.bf16.msra.mxu1 %v1985_v28  ;;  %1155 = vmatpush1.bf16.msra.mxu0 %v1987_v29  ;;  %v325_v28 = vld [vmem:[#allocation7 + $0x3d0] sm:$0xff] }
 0x154   :  { %1113 = vmatprep.subr.bf16.mxu1 %v1994_v30  ;;  %1156 = vmatprep.subr.bf16.mxu0 %v1996_v31  ;;  %v329_v29 = vld [vmem:[#allocation7 + $0x3f0] sm:$0xff]  ;;  %v326_v30 = vld [vmem:[#allocation7 + $0x3d8] sm:$0xff] }
 0x155   :  { %v330_v31 = vld [vmem:[#allocation7 + $0x3f8] sm:$0xff]  ;;  %v2058_v34 = vcombine.high %v325_v28, %v329_v29 }
 0x156   :  { %v2060_v35 = vcombine.high %v326_v30, %v330_v31 }
 0x157   :  { %1114 = vmatpush1.bf16.msra.mxu1 %v1993_v36  ;;  %1157 = vmatpush1.bf16.msra.mxu0 %v1995_v37  ;;  %v2057_v36 = vcombine.low %v325_v28, %v329_v29  ;;  %v2059_v37 = vcombine.low %v326_v30, %v330_v31 }
 0x158   :  { %1115 = vmatprep.subr.bf16.mxu1 %v2002_v39  ;;  %1158 = vmatprep.subr.bf16.mxu0 %v2004_v40  ;;  %v2248_v39 = vld [vmem:[#allocation8 + $0x40] sm:$0xff]  }
 0x159   :  { %v2249_v40 = vld [vmem:[#allocation8 + $0xc0] sm:$0xff]  }
 0x15b   :  { %1116 = vmatpush1.bf16.msra.mxu1 %v2001_v45  ;;  %1159 = vmatpush1.bf16.msra.mxu0 %v2003_v46  ;;  %v2254_v45 = vld [vmem:[#allocation8 + $0x8] sm:$0xff]  }
 0x15c   :  { %1117 = vmatprep.subr.bf16.mxu1 %v2010_v47  ;;  %1160 = vmatprep.subr.bf16.mxu0 %v2012_v48  ;;  %v2255_v46 = vld [vmem:[#allocation8 + $0x88] sm:$0xff]   ;;  %v2256_v47 = vld [vmem:[#allocation8 + $0x50] sm:$0xff]  }
 0x15d   :  { %v2257_v48 = vld [vmem:[#allocation8 + $0xd0] sm:$0xff]  }
 0x15f   :  { %1118 = vmatpush1.bf16.msra.mxu1 %v2009_v53  ;;  %1161 = vmatpush1.bf16.msra.mxu0 %v2011_v54  ;;  %v2262_v53 = vld [vmem:[#allocation8 + $0x18] sm:$0xff]   ;;  %v2264_v54 = vld [vmem:[#allocation8 + $0x60] sm:$0xff]  }
 0x160   :  { %1119 = vmatprep.subr.bf16.mxu1 %v2018_v55  ;;  %1162 = vmatprep.subr.bf16.mxu0 %v2020_v56  ;;  %v2265_v55 = vld [vmem:[#allocation8 + $0xe0] sm:$0xff]  }
 0x161   :  { %v2266_v56 = vld [vmem:[#allocation8 + $0x20] sm:$0xff]  }
 0x163   :  { %1120 = vmatpush1.bf16.msra.mxu1 %v2017_v61  ;;  %1163 = vmatpush1.bf16.msra.mxu0 %v2019_v62  ;;  %v2271_v61 = vld [vmem:[#allocation8 + $0xa8] sm:$0xff]   ;;  %v2272_v62 = vld [vmem:[#allocation8 + $0x70] sm:$0xff]  }
 0x164   :  { %1121 = vmatprep.subr.bf16.mxu1 %v2026_v63  ;;  %1164 = vmatprep.subr.bf16.mxu0 %v2028_v0  ;;  %v2273_v63 = vld [vmem:[#allocation8 + $0xf0] sm:$0xff]  }
 0x165   :  { %v2274_v0 = vld [vmem:[#allocation8 + $0x30] sm:$0xff]  }
 0x167   :  { %1122 = vmatpush1.bf16.msra.mxu1 %v2025_v5  ;;  %1165 = vmatpush1.bf16.msra.mxu0 %v2027_v6  ;;  %v2279_v5 = vld [vmem:[#allocation8 + $0xb8] sm:$0xff]   ;;  %v2280_v6 = vld [vmem:[#allocation8 + $0x140] sm:$0xff]  }
 0x168   :  { %1123 = vmatprep.subr.bf16.mxu1 %v2034_v7  ;;  %1166 = vmatprep.subr.bf16.mxu0 %v2036_v8  ;;  %v2281_v7 = vld [vmem:[#allocation8 + $0x1c0] sm:$0xff]   ;;  %v343_v8 = vsub.s32 2, %v2540_v19 }
 0x16a   :  { %v344_v12 = vrot.slane %v2561_v9, %v343_v8  ;;  %v2310_v8 = vld [vmem:[#allocation8 + $0x138] sm:$0xff]  }
 0x16b   :  { %1124 = vmatpush1.bf16.msra.mxu1 %v2033_v13  ;;  %1167 = vmatpush1.bf16.msra.mxu0 %v2035_v14  ;;  %v340_v13 = vrot.slane %v2561_v9, %v101_v22  ;;  %v348_v14 = vrot.slane %v2561_v9, %v347_v10  ;;  %v2311_v10 = vld [vmem:[#allocation8 + $0x1b8] sm:$0xff]  }
 0x16c   :  { %1125 = vmatprep.subr.bf16.mxu1 %v2042_v15  ;;  %1168 = vmatprep.subr.bf16.mxu0 %v2044_v16 }
 0x16f   :  { %1126 = vmatpush1.bf16.msra.mxu1 %v2041_v24  ;;  %1169 = vmatpush1.bf16.msra.mxu0 %v2043_v25 }
 0x170   :  { %1127 = vmatprep.subr.bf16.mxu1 %v2050_v26  ;;  %1170 = vmatprep.subr.bf16.mxu0 %v2052_v27 }
 0x173   :  { %1128 = vmatpush1.bf16.msra.mxu1 %v2049_v32  ;;  %1171 = vmatpush1.bf16.msra.mxu0 %v2051_v33 }
 0x174   :  { %1129 = vmatprep.subr.bf16.mxu1 %v2058_v34  ;;  %1172 = vmatprep.subr.bf16.mxu0 %v2060_v35 }
 0x177   :  { %1130 = vmatpush1.bf16.msra.mxu1 %v2057_v36  ;;  %1173 = vmatpush1.bf16.msra.mxu0 %v2059_v37 }
 0x178   :  { %2135 = vmatprep.subr.bf16.mxu1 %v2248_v39  ;;  %2157 = vmatprep.subr.bf16.mxu0 %v2249_v40 }
 0x17a   :  { %1132 = vmatmul.mubr.bf16.vlgmr.msra.gmra.mrb[4].mxu1 %v2551_v38  ;;  %1175 = vmatmul.mubr.bf16.vlgmr.msra.gmra.mrb[8].mxu0 %v2551_v38  ;;  %v2263_v38 = vld [vmem:[#allocation8 + $0x98] sm:$0xff]  }
 0x17b   :  { %2136 = vmatpush3.bf16.msra.mxu1 %v2250_v41  ;;  %2158 = vmatpush3.bf16.msra.mxu0 %v2251_v42 }
 0x17c   :  { %2137 = vmatprep.subr.bf16.mxu1 %v2252_v43  ;;  %2159 = vmatprep.subr.bf16.mxu0 %v2253_v44 }
 0x17f   :  { %2138 = vmatpush3.bf16.msra.mxu1 %v2254_v45  ;;  %2160 = vmatpush3.bf16.msra.mxu0 %v2255_v46  ;;  %v2282_v45 = vld [vmem:[#allocation8 + $0x100] sm:$0xff]  }
 0x180   :  { %2139 = vmatprep.subr.bf16.mxu1 %v2256_v47  ;;  %2161 = vmatprep.subr.bf16.mxu0 %v2257_v48  ;;  %v2283_v46 = vld [vmem:[#allocation8 + $0x180] sm:$0xff]   ;;  %v2284_v47 = vld [vmem:[#allocation8 + $0x148] sm:$0xff]  }
 0x181   :  { %v2285_v48 = vld [vmem:[#allocation8 + $0x1c8] sm:$0xff]  }
 0x183   :  { %2140 = vmatpush3.bf16.msra.mxu1 %v2258_v49  ;;  %2162 = vmatpush3.bf16.msra.mxu0 %v2259_v50  ;;  %v2286_v49 = vld [vmem:[#allocation8 + $0x108] sm:$0xff]  }
 0x184   :  { %2141 = vmatprep.subr.bf16.mxu1 %v2260_v51  ;;  %2163 = vmatprep.subr.bf16.mxu0 %v2261_v52  ;;  %v2287_v50 = vld [vmem:[#allocation8 + $0x188] sm:$0xff]   ;;  %v2288_v51 = vld [vmem:[#allocation8 + $0x150] sm:$0xff]  }
 0x185   :  { %v2289_v52 = vld [vmem:[#allocation8 + $0x1d0] sm:$0xff]  }
 0x187   :  { %2142 = vmatpush3.bf16.msra.mxu1 %v2262_v53  ;;  %2164 = vmatpush3.bf16.msra.mxu0 %v2263_v38  ;;  %v2290_v53 = vld [vmem:[#allocation8 + $0x110] sm:$0xff]  }
 0x188   :  { %2143 = vmatprep.subr.bf16.mxu1 %v2264_v54  ;;  %2165 = vmatprep.subr.bf16.mxu0 %v2265_v55  ;;  %v2291_v38 = vld [vmem:[#allocation8 + $0x190] sm:$0xff]   ;;  %v2292_v54 = vld [vmem:[#allocation8 + $0x158] sm:$0xff]  }
 0x189   :  { %v2293_v55 = vld [vmem:[#allocation8 + $0x1d8] sm:$0xff]  }
 0x18b   :  { %2144 = vmatpush3.bf16.msra.mxu1 %v2266_v56  ;;  %2166 = vmatpush3.bf16.msra.mxu0 %v2267_v57  ;;  %v2294_v56 = vld [vmem:[#allocation8 + $0x118] sm:$0xff]  }
 0x18c   :  { %2145 = vmatprep.subr.bf16.mxu1 %v2268_v58  ;;  %2167 = vmatprep.subr.bf16.mxu0 %v2269_v59  ;;  %v2295_v57 = vld [vmem:[#allocation8 + $0x198] sm:$0xff]   ;;  %v2296_v58 = vld [vmem:[#allocation8 + $0x160] sm:$0xff]  }
 0x18d   :  { %v2297_v59 = vld [vmem:[#allocation8 + $0x1e0] sm:$0xff]  }
 0x18f   :  { %2146 = vmatpush3.bf16.msra.mxu1 %v2270_v60  ;;  %2168 = vmatpush3.bf16.msra.mxu0 %v2271_v61  ;;  %v2298_v60 = vld [vmem:[#allocation8 + $0x120] sm:$0xff]  }
 0x190   :  { %2147 = vmatprep.subr.bf16.mxu1 %v2272_v62  ;;  %2169 = vmatprep.subr.bf16.mxu0 %v2273_v63  ;;  %v2299_v61 = vld [vmem:[#allocation8 + $0x1a0] sm:$0xff]   ;;  %v2300_v62 = vld [vmem:[#allocation8 + $0x168] sm:$0xff]  }
 0x191   :  { %v2301_v63 = vld [vmem:[#allocation8 + $0x1e8] sm:$0xff]  }
 0x193   :  { %2148 = vmatpush3.bf16.msra.mxu1 %v2274_v0  ;;  %2170 = vmatpush3.bf16.msra.mxu0 %v2275_v1  ;;  %v2302_v0 = vld [vmem:[#allocation8 + $0x128] sm:$0xff]  }
 0x194   :  { %2149 = vmatprep.subr.bf16.mxu1 %v2276_v2  ;;  %2171 = vmatprep.subr.bf16.mxu0 %v2277_v3  ;;  %v2303_v1 = vld [vmem:[#allocation8 + $0x1a8] sm:$0xff]   ;;  %v2304_v2 = vld [vmem:[#allocation8 + $0x170] sm:$0xff]  }
 0x195   :  { %v2305_v3 = vld [vmem:[#allocation8 + $0x1f0] sm:$0xff]  }
 0x197   :  { %2150 = vmatpush3.bf16.msra.mxu1 %v2278_v4  ;;  %2172 = vmatpush3.bf16.msra.mxu0 %v2279_v5  ;;  %v2306_v4 = vld [vmem:[#allocation8 + $0x130] sm:$0xff]  }
 0x198   :  { %2179 = vmatprep.subr.bf16.mxu1 %v2280_v6  ;;  %2201 = vmatprep.subr.bf16.mxu0 %v2281_v7  ;;  %v2307_v5 = vld [vmem:[#allocation8 + $0x1b0] sm:$0xff]   ;;  %v2308_v6 = vld [vmem:[#allocation8 + $0x178] sm:$0xff]  }
 0x199   :  { %v2309_v7 = vld [vmem:[#allocation8 + $0x1f8] sm:$0xff]  }
 0x20d   :  { %v1047_v15 = vpop.f32.mrb[0].mxu1  ;;  %v1090_v16 = vpop.f32.mrb[4].mxu0 }
 0x20e   :  { %v1048_v17 = vadd.f32 %v1047_v15, %v336_v11  ;;  %v1091_v18 = vadd.f32 %v1090_v16, %v344_v12  ;;  %v1049_v21 = vpop.f32.mrb[1].mxu1  ;;  %v1092_v23 = vpop.f32.mrb[5].mxu0 }
 0x20f   :  { %v1050_v24 = vadd.f32 %v1049_v21, %v340_v13  ;;  %v1093_v25 = vadd.f32 %v1092_v23, %v348_v14  ;;  %v1051_v26 = vpop.f32.mrb[2].mxu1  ;;  %v1094_v27 = vpop.f32.mrb[6].mxu0 }
 0x210   :  { %v1052_v28 = vadd.f32 %v1051_v26, %v336_v11  ;;  %v1095_v20 = vadd.f32 %v1094_v27, %v344_v12  ;;  %v1053_v29 = vpop.f32.mrb[3].mxu1  ;;  %v1096_v30 = vpop.f32.mrb[7].mxu0  ;;  %v1185_v33 = vmax.f32 %v1048_v17, 0.0  ;;  %v1187_v22 = vmax.f32 %v1091_v18, 0.0 }
 0x211   :  { %v1054_v31 = vadd.f32 %v1053_v29, %v340_v13  ;;  %v1097_v32 = vadd.f32 %v1096_v30, %v348_v14  ;;  %v1186_v36 = vmax.f32 %v1050_v24, 0.0  ;;  %v1188_v37 = vmax.f32 %v1093_v25, 0.0 }
 0x212   :  { %v1193_v34 = vmax.f32 %v1052_v28, 0.0  ;;  %v1195_v35 = vmax.f32 %v1095_v20, 0.0  ;;  %v351_v11 = vsub.s32 4, %v2540_v19  ;;  %v359_v12 = vsub.s32 6, %v2540_v19 }
 0x213   :  { %v1194_v39 = vmax.f32 %v1054_v31, 0.0  ;;  %v1196_v40 = vmax.f32 %v1097_v32, 0.0  ;;  %v355_v13 = vsub.s32 5, %v2540_v19  ;;  %v363_v14 = vsub.s32 7, %v2540_v19 }
 0x214   :  { %v1201_v41 = vpack.c.bf16 %v1193_v34, %v1185_v33  ;;  %v1203_v42 = vpack.c.bf16 %v1195_v35, %v1187_v22  ;;  %v352_v15 = vrot.slane %v2561_v9, %v351_v11  ;;  %v360_v16 = vrot.slane %v2561_v9, %v359_v12 }
 0x215   :  { %v1202_v43 = vpack.c.bf16 %v1194_v39, %v1186_v36  ;;  %v1204_v44 = vpack.c.bf16 %v1196_v40, %v1188_v37  ;;  %v356_v17 = vrot.slane %v2561_v9, %v355_v13  ;;  %v364_v18 = vrot.slane %v2561_v9, %v363_v14 }
 0x217   :  { %1760 = vmatprep.mubr.bf16.mxu1 %v1202_v43  ;;  %1801 = vmatprep.mubr.bf16.mxu0 %v1204_v44 }
 0x218   :  { %1761 = vmatmul.mubr.bf16.vlgmr.msra.gmra.mrb[8].mxu1 %v1201_v41  ;;  %1802 = vmatmul.mubr.bf16.vlgmr.msra.gmra.mrb[12].mxu0 %v1203_v42 }
 0x219   :  { %2180 = vmatpush3.bf16.msra.mxu1 %v2282_v45  ;;  %2202 = vmatpush3.bf16.msra.mxu0 %v2283_v46 }
 0x21a   :  { %2181 = vmatprep.subr.bf16.mxu1 %v2284_v47  ;;  %2203 = vmatprep.subr.bf16.mxu0 %v2285_v48 }
 0x21d   :  { %2182 = vmatpush3.bf16.msra.mxu1 %v2286_v49  ;;  %2204 = vmatpush3.bf16.msra.mxu0 %v2287_v50  ;;  %v2061_v49 = vld [vmem:[%s2604_s6] ss:$0 sm:$0xff]  ;;  %s2445_s6 = smov [#allocation10]  }
 0x21e   :  { %2183 = vmatprep.subr.bf16.mxu1 %v2288_v51  ;;  %2205 = vmatprep.subr.bf16.mxu0 %v2289_v52  ;;  %s1909_s10 = sshll.u32 %s2445_s6, 4  ;;  %s1910_s10 = int_to_ptr.vmem [resolvable:$true] %s1909_s10 }
 0x21f   :  { %s2404_s11 = scalar_lea.vmem %s1910_s10, 128  ;;  %p2409_p5 = scmp.lt.s32.totalorder %s1910_s10, %s1910_s10 }
 0x220   :  { %p2405_p4 = scmp.ne.s32.totalorder %s1910_s10, %s2404_s11  ;;  %p2410_p6 = scmp.lt.s32.totalorder %s2404_s11, %s2404_s11 }
 0x221   :  { %2184 = vmatpush3.bf16.msra.mxu1 %v2290_v53  ;;  %2206 = vmatpush3.bf16.msra.mxu0 %v2291_v38 }
 0x222   :  { %2185 = vmatprep.subr.bf16.mxu1 %v2292_v54  ;;  %2207 = vmatprep.subr.bf16.mxu0 %v2293_v55  ;;  %p2411_p7 = por %p2410_p6, %p2409_p5 }
 0x224   :  { %p2412_p8 = pnand %p2411_p7, %p2405_p4 }
 0x225   :  { %2186 = vmatpush3.bf16.msra.mxu1 %v2294_v56  ;;  %2208 = vmatpush3.bf16.msra.mxu0 %v2295_v57 }
 0x226   :  { %2187 = vmatprep.subr.bf16.mxu1 %v2296_v58  ;;  %2209 = vmatprep.subr.bf16.mxu0 %v2297_v59 }
 0x229   :  { %2188 = vmatpush3.bf16.msra.mxu1 %v2298_v60  ;;  %2210 = vmatpush3.bf16.msra.mxu0 %v2299_v61 }
 0x22a   :  { %2189 = vmatprep.subr.bf16.mxu1 %v2300_v62  ;;  %2211 = vmatprep.subr.bf16.mxu0 %v2301_v63 }
 0x22d   :  { %2190 = vmatpush3.bf16.msra.mxu1 %v2302_v0  ;;  %2212 = vmatpush3.bf16.msra.mxu0 %v2303_v1 }
 0x22e   :  { %2191 = vmatprep.subr.bf16.mxu1 %v2304_v2  ;;  %2213 = vmatprep.subr.bf16.mxu0 %v2305_v3 }
 0x231   :  { %2192 = vmatpush3.bf16.msra.mxu1 %v2306_v4  ;;  %2214 = vmatpush3.bf16.msra.mxu0 %v2307_v5 }
 0x232   :  { %2193 = vmatprep.subr.bf16.mxu1 %v2308_v6  ;;  %2215 = vmatprep.subr.bf16.mxu0 %v2309_v7 }
 0x235   :  { %2194 = vmatpush3.bf16.msra.mxu1 %v2310_v8  ;;  %2216 = vmatpush3.bf16.msra.mxu0 %v2311_v10 }
 0x24d   :  { %v1133_v21 = vpop.f32.mrb[4].mxu1  ;;  %v1176_v23 = vpop.f32.mrb[8].mxu0 }
 0x24e   :  { %v1134_v24 = vadd.f32 %v1133_v21, %v352_v15  ;;  %v1177_v25 = vadd.f32 %v1176_v23, %v360_v16  ;;  %v1135_v26 = vpop.f32.mrb[5].mxu1  ;;  %v1178_v27 = vpop.f32.mrb[9].mxu0 }
 0x24f   :  { %v1136_v28 = vadd.f32 %v1135_v26, %v356_v17  ;;  %v1179_v20 = vadd.f32 %v1178_v27, %v364_v18  ;;  %v1137_v29 = vpop.f32.mrb[6].mxu1  ;;  %v1180_v30 = vpop.f32.mrb[10].mxu0 }
 0x250   :  { %v1138_v31 = vadd.f32 %v1137_v29, %v352_v15  ;;  %v1181_v19 = vadd.f32 %v1180_v30, %v360_v16  ;;  %v1139_v32 = vpop.f32.mrb[7].mxu1  ;;  %v1182_v33 = vpop.f32.mrb[11].mxu0  ;;  %v1189_v35 = vmax.f32 %v1134_v24, 0.0  ;;  %v1191_v36 = vmax.f32 %v1177_v25, 0.0 }
 0x251   :  { %v1140_v22 = vadd.f32 %v1139_v32, %v356_v17  ;;  %v1183_v34 = vadd.f32 %v1182_v33, %v364_v18  ;;  %v1190_v39 = vmax.f32 %v1136_v28, 0.0  ;;  %v1192_v40 = vmax.f32 %v1179_v20, 0.0 }
 0x252   :  { %v1197_v37 = vmax.f32 %v1138_v31, 0.0  ;;  %v1199_v9 = vmax.f32 %v1181_v19, 0.0 }
 0x253   :  { %v1198_v41 = vmax.f32 %v1140_v22, 0.0  ;;  %v1200_v42 = vmax.f32 %v1183_v34, 0.0 }
 0x254   :  { %v1205_v43 = vpack.c.bf16 %v1197_v37, %v1189_v35  ;;  %v1207_v44 = vpack.c.bf16 %v1199_v9, %v1191_v36 }
 0x255   :  { %v1206_v45 = vpack.c.bf16 %v1198_v41, %v1190_v39  ;;  %v1208_v46 = vpack.c.bf16 %v1200_v42, %v1192_v40 }
 0x257   :  { %1842 = vmatprep.mubr.bf16.mxu1 %v1206_v45  ;;  %1883 = vmatprep.mubr.bf16.mxu0 %v1208_v46 }
 0x258   :  { %1843 = vmatmul.mubr.bf16.vlgmr.msra.gmra.mrb[12].mxu1 %v1205_v43  ;;  %1884 = vmatmul.mubr.bf16.vlgmr.msra.gmra.mrb[16].mxu0 %v1207_v44 }
 0x2eb   :  { %v2151_v47 = vpop.f32.mrb[8].mxu1  ;;  %v2173_v48 = vpop.f32.mrb[12].mxu0 }
 0x2ec   :  { %v2152_v50 = vpop.f32.mrb[9].mxu1  ;;  %v2174_v51 = vpop.f32.mrb[13].mxu0 }
 0x2ed   :  { %v2153_v52 = vadd.f32 %v2152_v50, %v2151_v47  ;;  %v2175_v53 = vadd.f32 %v2174_v51, %v2173_v48  ;;  %v2154_v38 = vpop.f32.mrb[10].mxu1  ;;  %v2176_v54 = vpop.f32.mrb[14].mxu0 }
 0x2ee   :  { %v2155_v55 = vpop.f32.mrb[11].mxu1  ;;  %v2177_v56 = vpop.f32.mrb[15].mxu0 }
 0x2ef   :  { %v1763_v57 = vadd.f32 %v2153_v52, %v2061_v49  ;;  %v2156_v58 = vadd.f32 %v2155_v55, %v2154_v38  ;;  %v2178_v59 = vadd.f32 %v2177_v56, %v2176_v54 }
 0x2f1   :  { %v1804_v60 = vadd.f32 %v2175_v53, %v1763_v57  ;;  %v1766_v61 = vadd.f32 %v2156_v58, %v2061_v49 }
 0x2f3   :  { %v1807_v62 = vadd.f32 %v2178_v59, %v1766_v61 }
 0x32b   :  { %v2195_v63 = vpop.f32.mrb[12].mxu1  ;;  %v2217_v0 = vpop.f32.mrb[16].mxu0 }
 0x32c   :  { %v2196_v1 = vpop.f32.mrb[13].mxu1  ;;  %v2218_v2 = vpop.f32.mrb[17].mxu0 }
 0x32d   :  { %v2197_v3 = vadd.f32 %v2196_v1, %v2195_v63  ;;  %v2219_v4 = vadd.f32 %v2218_v2, %v2217_v0  ;;  %v2198_v5 = vpop.f32.mrb[14].mxu1  ;;  %v2220_v6 = vpop.f32.mrb[18].mxu0 }
 0x32e   :  { %v2199_v7 = vpop.f32.mrb[15].mxu1  ;;  %v2221_v8 = vpop.f32.mrb[19].mxu0 }
 0x32f   :  { %v1845_v10 = vadd.f32 %v2197_v3, %v1804_v60  ;;  %v2200_v11 = vadd.f32 %v2199_v7, %v2198_v5  ;;  %v2222_v12 = vadd.f32 %v2221_v8, %v2220_v6 }
 0x331   :  { %v1886_v13 = vadd.f32 %v2219_v4, %v1845_v10  ;;  %v1848_v14 = vadd.f32 %v2200_v11, %v1807_v62 }
 0x333   :  { %v1889_v15 = vadd.f32 %v2222_v12, %v1848_v14  ;;  %2312 = vtanh.f32 %v1886_v13 }
 0x335   :  { %2314 = vtanh.f32 %v1889_v15 }
 0x33d   :  { %v2313_v16 = vpop.eup %2312 }
 0x33f   :  { %v2315_v17 = vpop.eup %2314 }
 0x340   :  { %v2133_v18 = vpack.c.bf16 %v2315_v17, %v2313_v16 }
 0x342   :  { %2134 = vst [vmem:[#allocation10] sm:$0xff] %v2133_v18  }
 0x343   :  { %2415 = shalt.err (!%p2412_p8)
}
 0x344   :  { %s2416_s14 = scalar_lea.hbm %s2605_s7, 128 }
 0x345   :  { %p2417_p9 = scmp.ne.s32.totalorder %s2605_s7, %s2416_s14  ;;  %p2420_p10 = scmp.lt.u32.totalorder %s2416_s14, %s2605_s7 }
 0x347   :  { %p2422_p11 = pnand %p2420_p10, %p2417_p9 }
 0x349   :  { %2425 = shalt.err (!%p2422_p11)
}
 0x34a   :  { %1915 = dma.vmem_to_hbm [thread:$0]  %s1910_s10, 128, %s2605_s7, [#allocation4], %s2438_s1, %s2438_s1, %s2439_s25  }
 0x34b   :  { %2432 = dma.done.wait [#allocation4], 128  }
 0x34c   :  { %2433 = vsyncadd [#allocation4], 4294967168 }
 0x34d   :  { %1919 = vsyncpa [#allocation3], 1 }
 0x34e   :  { %1920 = vsyncpa [#allocation6], 1 }
 0x34f   :  { %1921 = vsyncpa [#allocation9], 1 }
 0x350   :  { %1922 = vsyncpa [#allocation4], 1 }

</bundles_post_ra>
